<compile_context>
chip_gen: v5e
topology: v5e:2x2
jax: 0.10.0
libtpu: 0.0.40
codegen_flags: <defaults>
</compile_context>

<pallas_src>
import functools

import jax
import jax.numpy as jnp
from jax import lax
from jax.experimental import pallas as pl
from jax.experimental.pallas import tpu as pltpu

LANES = 128


def _vmem_capacity_bytes():
    try:
        cap = int(pltpu.get_tpu_info().vmem_capacity_bytes)
        if cap > 0:
            return cap
    except Exception:
        pass
    return 64 << 20  # conservative fallback: v7x per-TensorCore VMEM


# --------------------------- fused single-pass path ---------------------------

def _fused_kernel(x_ref, s_ref, o_ref, *, n, eps):
    """x_ref / s_ref / o_ref: (R, C) = one full batch row."""
    x = x_ref[...].astype(jnp.float32)
    x2 = x * x
    r, c = x2.shape
    if r % 8 == 0 and r > 8:
        # Fold sublane groups with VALU adds; leaves one small XLU reduce.
        x2 = jnp.sum(x2.reshape(r // 8, 8, c), axis=0)
    ssq = jnp.sum(jnp.sum(x2, axis=0, keepdims=True), axis=1, keepdims=True)  # (1,1)
    inv = lax.rsqrt(ssq * (1.0 / n) + eps)                                    # (1,1)
    o_ref[...] = (x * inv * s_ref[...].astype(jnp.float32)).astype(o_ref.dtype)


def _rmsnorm_fused(x3, s2, n, eps, vmem_limit):
    B, R, C = x3.shape
    xi = x3.dtype.itemsize
    return pl.pallas_call(
        functools.partial(_fused_kernel, n=n, eps=eps),
        out_shape=jax.ShapeDtypeStruct((B, R, C), x3.dtype),
        grid_spec=pltpu.PrefetchScalarGridSpec(
            num_scalar_prefetch=0,
            grid=(B,),
            in_specs=[
                pl.BlockSpec((pl.Squeezed(), R, C), lambda b: (b, 0, 0)),
                pl.BlockSpec((R, C), lambda b: (0, 0)),      # constant block: DMA'd once
            ],
            out_specs=pl.BlockSpec((pl.Squeezed(), R, C), lambda b: (b, 0, 0)),
        ),
        compiler_params=pltpu.CompilerParams(
            dimension_semantics=("parallel",),
            vmem_limit_bytes=int(vmem_limit),
        ),
        cost_estimate=pl.CostEstimate(
            flops=4 * B * R * C,
            transcendentals=B,
            bytes_accessed=2 * B * R * C * xi + R * C * s2.dtype.itemsize,
        ),
    )(x3, s2)


# --------------------------- two-pass streaming path --------------------------

def _sumsq_kernel(x_ref, ssq_ref, acc_ref, *, tr, r_total, num_t):
    """Pass 1: per-batch lane-wise sum of squares into a resident accumulator."""
    t = pl.program_id(1)

    @pl.when(t == 0)
    def _init():
        acc_ref[...] = jnp.zeros_like(acc_ref)

    x = x_ref[...].astype(jnp.float32)
    if r_total % tr != 0:
        # Last tile of the row is partial: zero the out-of-range rows.
        rid = lax.broadcasted_iota(jnp.int32, (tr, LANES), 0) + t * tr
        x = jnp.where(rid < r_total, x, 0.0)
    x2 = x * x
    if tr % 8 == 0:
        # VALU-only accumulation into the (8,128) scratch; no per-tile XLU reduce.
        acc_ref[...] += jnp.sum(x2.reshape(tr // 8, 8, LANES), axis=0)
    else:
        acc_ref[0:1, :] += jnp.sum(x2, axis=0, keepdims=True)

    @pl.when(t == num_t - 1)
    def _finalize():
        ssq_ref[...] = jnp.sum(acc_ref[...], axis=0, keepdims=True)


def _apply_kernel(ssq_ref, x_ref, s_ref, o_ref, *, n, eps):
    """Pass 2: out = x * rsqrt(mean(x^2)) * scale (rsqrt folded in-kernel)."""
    inv = lax.rsqrt(jnp.sum(ssq_ref[...], axis=1, keepdims=True) * (1.0 / n) + eps)
    x = x_ref[...].astype(jnp.float32)
    o_ref[...] = (x * inv * s_ref[...].astype(jnp.float32)).astype(o_ref.dtype)


def _rmsnorm_two_pass(x3, s2, n, eps, vmem_cap):
    B, R, _ = x3.shape
    xi = x3.dtype.itemsize
    si = s2.dtype.itemsize

    # Streaming tile: ~8 MiB on 128 MiB VMEM parts (v5e/v6e), ~4 MiB on v7x.
    step = 16 if xi < 4 else 8                 # bf16 native (16,128) sublane tile
    tile_bytes = (8 << 20) if vmem_cap >= (96 << 20) else (4 << 20)
    target = max(step, (tile_bytes // (LANES * xi)) // step * step)
    tr = R if R <= target else target
    num_t = int(pl.cdiv(R, tr))

    tile_x = tr * LANES * xi
    tile_s = tr * LANES * si
    tile_f32 = tr * LANES * 4
    # Exact budgets: double-buffered blocks + in-kernel f32 temporaries + headroom.
    vmem1 = 2 * tile_x + 3 * tile_f32 + 2 * LANES * 4 + 8 * LANES * 4 + (4 << 20)
    vmem2 = 4 * tile_x + 2 * tile_s + 3 * tile_f32 + 4 * LANES * 4 + (4 << 20)
    vmem1 = int(min(vmem1, vmem_cap - (4 << 20)))
    vmem2 = int(min(vmem2, vmem_cap - (4 << 20)))

    ssq = pl.pallas_call(
        functools.partial(_sumsq_kernel, tr=tr, r_total=R, num_t=num_t),
        out_shape=jax.ShapeDtypeStruct((B, 1, LANES), jnp.float32),
        grid_spec=pltpu.PrefetchScalarGridSpec(
            num_scalar_prefetch=0,
            grid=(B, num_t),                                  # reduction axis last
            in_specs=[pl.BlockSpec((pl.Squeezed(), tr, LANES),
                                   lambda b, t: (b, t, 0))],
            out_specs=pl.BlockSpec((pl.Squeezed(), 1, LANES),
                                   lambda b, t: (b, 0, 0)),
            scratch_shapes=[pltpu.VMEM((8, LANES), jnp.float32)],
        ),
        compiler_params=pltpu.CompilerParams(
            dimension_semantics=("parallel", "arbitrary"),
            vmem_limit_bytes=vmem1,
        ),
        cost_estimate=pl.CostEstimate(
            flops=2 * B * R * LANES,
            transcendentals=0,
            bytes_accessed=B * R * LANES * xi + B * LANES * 4,
        ),
    )(x3)

    out3 = pl.pallas_call(
        functools.partial(_apply_kernel, n=n, eps=eps),
        out_shape=jax.ShapeDtypeStruct((B, R, LANES), x3.dtype),
        grid_spec=pltpu.PrefetchScalarGridSpec(
            num_scalar_prefetch=0,
            # t outer / b inner: the scale block index is constant across the
            # inner b sweep, so each scale tile is DMA'd once per t, not per (t,b).
            grid=(num_t, B),
            in_specs=[
                pl.BlockSpec((pl.Squeezed(), 1, LANES), lambda t, b: (b, 0, 0)),
                pl.BlockSpec((pl.Squeezed(), tr, LANES), lambda t, b: (b, t, 0)),
                pl.BlockSpec((tr, LANES), lambda t, b: (t, 0)),
            ],
            out_specs=pl.BlockSpec((pl.Squeezed(), tr, LANES),
                                   lambda t, b: (b, t, 0)),
        ),
        compiler_params=pltpu.CompilerParams(
            dimension_semantics=("parallel", "parallel"),
            vmem_limit_bytes=vmem2,
        ),
        cost_estimate=pl.CostEstimate(
            flops=2 * B * R * LANES,
            transcendentals=B * num_t,
            bytes_accessed=2 * B * R * LANES * xi + R * LANES * si + B * LANES * 4,
        ),
    )(ssq, x3, s2)
    return out3


# ----------------------------------- wrapper -----------------------------------

def rmsnorm_pallas(x, scale_full, eps=0.0):
    """x: (B, S, D); scale_full: (max_seq, D). Returns (B, S, D)."""
    B, S, D = x.shape
    n = S * D
    # Pre-cast scale once so its per-tile HBM read matches x's width.
    scale = scale_full[:S, :].astype(x.dtype)
    vmem_cap = _vmem_capacity_bytes()
    xi = x.dtype.itemsize
    si = scale.dtype.itemsize

    def fused_footprint(row_elems):
        # 2x in + 2x out (pipelined) + 2x scale + in-kernel f32 temporaries.
        return (4 * row_elems * xi + 2 * row_elems * si
                + 3 * row_elems * 4 + (1 << 20))

    if n % LANES == 0:
        R = n // LANES
        x3 = x.reshape(B, R, LANES)            # contiguous reshape: no HBM copy
        s2 = scale.reshape(R, LANES)
        fp = fused_footprint(n)
        if fp + (6 << 20) <= vmem_cap:
            out3 = _rmsnorm_fused(x3, s2, n, eps, fp + (6 << 20))
        else:
            out3 = _rmsnorm_two_pass(x3, s2, n, eps, vmem_cap)
        return out3.reshape(B, S, D)

    # S*D not a lane multiple: run the fused kernel on the natural (S, D) block
    # (full-extent last dims are legal) -> still no host pad / slice copies.
    fp = fused_footprint(n)
    if fp + (6 << 20) <= vmem_cap:
        return _rmsnorm_fused(x, scale, n, eps, fp + (6 << 20))

    # Rare: ragged S*D that also exceeds VMEM.  Pad once to a lane multiple and
    # stream with the two-pass path (accepts one pad + one final slice copy).
    n_pad = int(pl.cdiv(n, LANES)) * LANES
    xf = jnp.pad(x.reshape(B, n), ((0, 0), (0, n_pad - n)))
    sf = jnp.pad(scale.reshape(n), ((0, n_pad - n),))
    R = n_pad // LANES
    out3 = _rmsnorm_two_pass(xf.reshape(B, R, LANES), sf.reshape(R, LANES),
                             n, eps, vmem_cap)
    return out3.reshape(B, n_pad)[:, :n].reshape(B, S, D)


def rmsnorm_ref(x, scale_full):
    B, S, D = x.shape
    xf = x.astype(jnp.float32)
    ff_rms = jnp.linalg.norm(xf.reshape(B, -1), axis=-1) * ((S * D) ** -0.5)
    raw = xf / ff_rms[:, None, None]
    return (scale_full[:S, :].astype(jnp.float32)[None, :, :] * raw).astype(x.dtype)


if __name__ == "__main__":
    key = jax.random.PRNGKey(0)
    B, S, D = 2, 8, 32
    MAX_SEQ = 16

    kx, ks = jax.random.split(key)
    x = jax.random.normal(kx, (B, S, D), dtype=jnp.float32)
    # PyTorch init is torch.ones(layer_shape); add a tiny deterministic
    # perturbation so the elementwise scale path is actually exercised.
    scale_full = jnp.ones((MAX_SEQ, D), dtype=jnp.float32) + 0.01 * jax.random.normal(
        ks, (MAX_SEQ, D), dtype=jnp.float32)

    out = jax.block_until_ready(rmsnorm_pallas(x, scale_full))
    ref = rmsnorm_ref(x, scale_full)
    assert out.shape == (B, S, D)
    assert jnp.allclose(out, ref, atol=1e-5, rtol=1e-5), "mismatch vs reference"

    print("KERNEL_OK")
</pallas_src>

<mosaic_0001>
module attributes {stable_mosaic.version = 11 : i64} {
  func.func @_fused_kernel(%arg0: i32, %arg1: memref<1x2x128xf32, #tpu.memory_space<vmem>>, %arg2: memref<2x128xf32, #tpu.memory_space<vmem>>, %arg3: memref<1x2x128xf32, #tpu.memory_space<vmem>>) attributes {dimension_semantics = [#tpu.dimension_semantics<parallel>], iteration_bounds = array<i64: 2>, scalar_prefetch = 0 : i64, scratch_operands = 0 : i64, tpu.core_type = #tpu.core_type<tc>, window_params = [{transform_indices = @transform_0, window_bounds = array<i64: 1, 2, 128>}, {pipeline_mode = #tpu.pipeline_mode<synchronous>, transform_indices = @transform_1, window_bounds = array<i64: 2, 128>}, {transform_indices = @transform_2, window_bounds = array<i64: 1, 2, 128>}]} {
    %c0 = arith.constant 0 : index
    %c0_0 = arith.constant 0 : index
    %c0_1 = arith.constant 0 : index
    %0 = vector.load %arg1[%c0, %c0_0, %c0_1] : memref<1x2x128xf32, #tpu.memory_space<vmem>>, vector<1x2x128xf32>
    %1 = vector.shape_cast %0 : vector<1x2x128xf32> to vector<2x128xf32>
    %2 = arith.mulf %1, %1 : vector<2x128xf32>
    %cst = arith.constant dense<0.000000e+00> : vector<128xf32>
    %3 = vector.multi_reduction <add>, %2, %cst [0] : vector<2x128xf32> to vector<128xf32>
    %4 = vector.shape_cast %3 : vector<128xf32> to vector<1x128xf32>
    %cst_2 = arith.constant dense<0.000000e+00> : vector<1xf32>
    %5 = vector.multi_reduction <add>, %4, %cst_2 [1] : vector<1x128xf32> to vector<1xf32>
    %6 = vector.shape_cast %5 : vector<1xf32> to vector<1x1xf32>
    %cst_3 = arith.constant 3.906250e-03 : f32
    %7 = vector.broadcast %cst_3 : f32 to vector<1x1xf32>
    %8 = arith.mulf %6, %7 : vector<1x1xf32>
    %cst_4 = arith.constant 0.000000e+00 : f32
    %9 = vector.broadcast %cst_4 : f32 to vector<1x1xf32>
    %10 = arith.addf %8, %9 : vector<1x1xf32>
    %11 = math.rsqrt %10 : vector<1x1xf32>
    %12 = vector.broadcast %11 : vector<1x1xf32> to vector<2x128xf32>
    %13 = arith.mulf %1, %12 : vector<2x128xf32>
    %c0_5 = arith.constant 0 : index
    %c0_6 = arith.constant 0 : index
    %14 = vector.load %arg2[%c0_5, %c0_6] : memref<2x128xf32, #tpu.memory_space<vmem>>, vector<2x128xf32>
    %15 = arith.mulf %13, %14 : vector<2x128xf32>
    %c0_7 = arith.constant 0 : index
    %c0_8 = arith.constant 0 : index
    %c0_9 = arith.constant 0 : index
    %16 = vector.load %arg3[%c0_7, %c0_8, %c0_9] : memref<1x2x128xf32, #tpu.memory_space<vmem>>, vector<1x2x128xf32>
    %17 = vector.shape_cast %16 : vector<1x2x128xf32> to vector<2x128xf32>
    %18 = vector.shape_cast %15 : vector<2x128xf32> to vector<1x2x128xf32>
    tpu.vector_store %arg3[%c0_7, %c0_8, %c0_9], %18 {strides = array<i32>} : memref<1x2x128xf32, #tpu.memory_space<vmem>>, vector<1x2x128xf32>,
    return
  }
  func.func @transform_0(%arg0: i32) -> (i32, i32, i32) {
    %c0_i32 = arith.constant 0 : i32
    %c0_i32_0 = arith.constant 0 : i32
    %c0_i32_1 = arith.constant 0 : i32
    return %arg0, %c0_i32, %c0_i32_0 : i32, i32, i32
  }
  func.func @transform_1(%arg0: i32) -> (i32, i32) {
    %c0_i32 = arith.constant 0 : i32
    %c0_i32_0 = arith.constant 0 : i32
    %c0_i32_1 = arith.constant 0 : i32
    return %c0_i32, %c0_i32_0 : i32, i32
  }
  func.func @transform_2(%arg0: i32) -> (i32, i32, i32) {
    %c0_i32 = arith.constant 0 : i32
    %c0_i32_0 = arith.constant 0 : i32
    %c0_i32_1 = arith.constant 0 : i32
    return %arg0, %c0_i32, %c0_i32_0 : i32, i32, i32
  }
}

</mosaic_0001>

<bundles_post_ra>
// kernel: tpu_custom_call.1
= control target key start
LH: loop header
LB: loop body
LE: loop exit
PB: predicated region body
PF: predicated region fallthrough
CT: control target
= control target key end

     0   :  { %7 = vsyncpa [#allocation3], 0  ;;  %s663_s0 = inlined_call_operand.hbm [shape: f32[2,2,128], index: 0, kind: input, shape index: {}]   ;;  %s664_s1 = inlined_call_operand.hbm [shape: f32[2,128], index: 1, kind: input, shape index: {}]   ;;  %s665_s2 = inlined_call_operand.hbm [shape: f32[2,2,128], index: 2, kind: output, shape index: {}]  }
   0x1   :  { %9 = vsyncpa [#allocation3 + $0x1], 0 }
   0x2   :  { %10 = vsyncpa [#allocation6], 0 }
   0x3   :  { %11 = vsyncpa [#allocation4], 0 }
   0x4   :  { %13 = vsyncpa [#allocation4 + $0x1], 0  ;;  %s521_s9 = smov 0   ;;  %s523_s10 = smov 0  }
   0x5   :  { %s525_s11 = smov 0   ;;  %s527_s12 = smov 0  }
   0x6 LB: > { %s542_s13 = sadd.s32 4294967295, %s503_s12   ;;  %s300_s14 = sadd.s32 4294967294, %s503_s12   ;;  %s503_s12 = sphi %s527_s12, %s675_s12   ;;  %s499_s11 = sphi %s525_s11, %s674_s11   ;;  %s495_s10 = sphi %s523_s10, %s673_s10   ;;  %s491_s9 = sphi %s521_s9, %s672_s9  }
   0x7   : > { %p39_p0 = scmp.ne.s32.totalorder %s495_s10, %s491_s9  ;;  %p40_p1 = scmp.eq.s32.totalorder %s542_s13, 0 }
   0x8   : > { %p84_p2 = scmp.eq.s32.totalorder %s542_s13, 1  ;;  %p90_p3 = scmp.eq.s32.totalorder %s300_s14, 1 }
   0x9   : > { %p551_p4 = por %p40_p1, %p39_p0  ;;  %p301_p5 = scmp.ge.s32.totalorder %s503_s12, 1 }
   0xa   : > { %p556_p6 = por %p90_p3, %p39_p0  ;;  %p97_p7 = scmp.lt.s32.totalorder %s503_s12, 3 }
   0xb   : > { %s109_s19 = sshll.u32 %s664_s1, 4  ;;  %s505_s21 = smov [#allocation5]   ;;  %s110_s19 = int_to_ptr.hbm [resolvable:$true] %s109_s19 }
   0xc   : > { %p564_p8 = pnand %p301_p5, %p97_p7  ;;  %s111_s22 = sshll.u32 %s505_s21, 4  ;;  %s112_s22 = int_to_ptr.vmem [resolvable:$true] %s111_s22 }
   0xd   : > { %s574_s23 = sadd.s32 1, %s503_s12   ;;  %s26_s24 = sadd.s32 1, %s499_s11 }
   0xe   : > { %p322_p10 = pneg %p564_p8  ;;  %s23_s25 = ssub.s32 %s503_s12, %s574_s23 }
   0xf   : > { %p24_p12 = scmp.eq.s32.totalorder %s23_s25, 0  ;;  %p33_p13 = scmp.ne.s32.totalorder %s499_s11, %s495_s10 }
  0x10   : > { %p323_p11 = pnand %p322_p10, %p40_p1  ;;  %p34_p0 = scmp.eq.s32.totalorder %s503_s12, 0 }
  0x11   : > { %s583_s26 = scalar_select %p24_p12, %s499_s11, %s26_s24  }
  0x12   : > { %325 = dma.hbm_to_vmem [thread:$0]  (!%p323_p11), %s110_s19, 32, %s112_s22, [#allocation6]  }
  0x13   : > { %p587_p3 = por %p84_p2, %p33_p13  ;;  %p335_p5 = scmp.lt.s32.totalorder %s503_s12, 2 }
  0x14   : > { %s122_s28 = sand.u32 1, %s499_s11   ;;  %s305_s29 = sshll.u32 %s503_s12, 1 }
  0x15   : > { %p35_p7 = por %p34_p0, %p33_p13  ;;  %s304_s30 = sshll.u32 %s122_s28, 1 }
  0x16   : > { %s130_s5 = scalar_lea.hbm %s663_s0, %s305_s29  ;;  %s126_s7 = scalar_lea.vmem [#allocation2], %s304_s30 }
  0x17   : > { %s132_s6 = sshll.u32 %s130_s5, 4  ;;  %s134_s8 = sshll.u32 %s126_s7, 4  ;;  %s133_s6 = int_to_ptr.hbm [resolvable:$true] %s132_s6  ;;  %s135_s8 = int_to_ptr.vmem [resolvable:$true] %s134_s8 }
  0x18   : > { %p597_p10 = pnand %p335_p5, %p35_p7  ;;  %s123_s17 = scalar_lea.sflag [#allocation3], %s122_s28 }
  0x19   : > { %s403_s18 = sshra.s32 %s133_s6, 4  ;;  %s410_s24 = scalar_lea.hbm %s663_s0, 4  ;;  %s404_s18 = int_to_ptr.hbm [resolvable:$true] %s403_s18 }
  0x1a   : > { %s405_s19 = scalar_lea.hbm %s404_s18, 2  ;;  %p407_p11 = pneg %p597_p10 }
  0x1b   : > { %p406_p2 = scmp.ne.s32.totalorder %s404_s18, %s405_s19  ;;  %p411_p0 = scmp.lt.s32.totalorder %s404_s18, %s663_s0 }
  0x1c   : > { %p412_p5 = scmp.lt.s32.totalorder %s410_s24, %s405_s19 }
  0x1d   : > { %p408_p12 = pnand %p407_p11, %p406_p2 }
  0x1e   : > { %p413_p7 = por %p412_p5, %p411_p0 }
  0x1f   : > { %p409_p13 = pneg %p408_p12 }
  0x21   : > { %p414_p9 = pnand %p413_p7, %p409_p13 }
  0x23   : > { %417 = shalt.err (!%p414_p9)
}
  0x24   : > { %329 = dma.hbm_to_vmem [thread:$0]  (!%p597_p10), %s133_s6, 32, %s135_s8, %s123_s17  }
  0x25   : > { %143 = sbr.rel (%p564_p8) target bundleno = 204 (0xcc), region = 28  ;;  %s614_s28 = sand.u32 (!%p564_p8), 1, %s495_s10  }
  0x26   : > { %s307_s30 = sshll.u32 (!%p564_p8), %s614_s28, 1  ;;  %s146_s3 = scalar_lea.sflag (!%p564_p8), [#allocation3], %s614_s28 }
  0x27   : > { %s149_s4 = scalar_lea.vmem (!%p564_p8), [#allocation2], %s307_s30 }
  0x2a   : > { %478 = dma.done.wait (%p551_p4), %s146_s3, 32  }
  0x2b   : > { %480 = vsyncadd (%p551_p4), %s146_s3, 4294967264 }
  0x2c   : > { %482 = dma.done.wait (%p40_p1), [#allocation6], 32  }
  0x2d   : > { %484 = vsyncadd (%p40_p1), [#allocation6], 4294967264  ;;  %v176_v0 = vld [vmem:[%s149_s4] sm:$0x3]  ;;  %vm178_vm0 = vcmask 1041408   ;;  %s311_s15 = sshll.u32 %s542_s13, 1 }
  0x2e   : > { %v177_v1 = vmul.f32 %v176_v0, %v176_v0  ;;  %s215_s6 = scalar_lea.hbm %s665_s2, %s311_s15  ;;  %v201_v18 = vld [vmem:[#allocation5] sm:$0x3]  ;;  %s175_s7 = scalar_lea.vmem [#allocation7], %s307_s30 }
  0x2f   : > { %s217_s8 = sshll.u32 %s175_s7, 4  ;;  %s219_s14 = sshll.u32 %s215_s6, 4  ;;  %s218_s8 = int_to_ptr.vmem [resolvable:$true] %s217_s8  ;;  %s220_s14 = int_to_ptr.hbm [resolvable:$true] %s219_s14 }
  0x30   : > { %v179_v2 = vsel %vm178_vm0, %v177_v1, 0.0  ;;  %s205_s13 = scalar_lea.sflag [#allocation4], %s614_s28  ;;  %s447_s17 = sshra.s32 %s220_s14, 4  ;;  %s448_s17 = int_to_ptr.hbm [resolvable:$true] %s447_s17 }
  0x31   : > { %v180_v3 = vrot.slane %v179_v2, 4  ;;  %s449_s18 = scalar_lea.hbm %s448_s17, 2  ;;  %s453_s22 = scalar_lea.hbm %s665_s2, 4 }
  0x32   : > { %p450_p1 = scmp.ne.s32.totalorder %s448_s17, %s449_s18  ;;  %p454_p9 = scmp.lt.s32.totalorder %s448_s17, %s665_s2 }
  0x33   : > { %v181_v4 = vadd.f32 %v180_v3, %v179_v2  ;;  %p455_p10 = scmp.lt.s32.totalorder %s453_s22, %s449_s18 }
  0x34   : > { %p451_p4 = pnand %p450_p1, %p587_p3 }
  0x35   : > { %v182_v5 = vrot.slane %v181_v4, 2  ;;  %p456_p2 = por %p455_p10, %p454_p9 }
  0x36   : > { %p452_p8 = pneg %p451_p4 }
  0x37   : > { %v183_v6 = vadd.f32 %v182_v5, %v181_v4 }
  0x38   : > { %p457_p11 = pnand %p456_p2, %p452_p8 }
  0x39   : > { %v184_v7 = vrot.slane %v183_v6, 1 }
  0x3b   : > { %v185_v8 = vadd.f32 %v184_v7, %v183_v6 }
  0x3d   : > { %186 = vadd.xlane.f32.xlu0 %v185_v8 }
  0xb0   : > { %v187_v9 = vpop.xlane.xlu0 %186 }
  0xb1   : > { %v188_v10 = vmul.f32 0.00390625, %v187_v9 }
  0xb3   : > { %371 = vrsqrt.f32 %v188_v10  ;;  %vm196_vm2 = vweird.f32 %v188_v10 }
  0xb9   : > { %v372_v11 = vpop.eup %371 }
  0xba   : > { %v191_v12 = vmul.f32 %v372_v11, %v188_v10  ;;  %vm197_vm1 = vweird.f32 %v372_v11 }
  0xbb   : > { %vm198_vm3 = vmor %vm196_vm2, %vm197_vm1 }
  0xbc   : > { %v192_v13 = vmul.f32 %v372_v11, %v191_v12 }
  0xbe   : > { %v193_v14 = vmul.f32 0.5, %v192_v13 }
  0xc0   : > { %v194_v15 = vsub.f32 1.5, %v193_v14 }
  0xc2   : > { %v195_v16 = vmul.f32 %v372_v11, %v194_v15 }
  0xc4   : > { %v199_v17 = vsel %vm198_vm3, %v372_v11, %v195_v16 }
  0xc5   : > { %v200_v19 = vmul.f32 %v199_v17, %v176_v0 }
  0xc7   : > { %v202_v20 = vmul.f32 %v201_v18, %v200_v19 }
  0xc9   : > { %203 = vst [vmem:[%s175_s7] sm:$0x3] %v202_v20 }
  0xca   : > { %460 = shalt.err (!%p457_p11)
}
  0xcb   : > { %320 = dma.vmem_to_hbm [thread:$0]  (%p587_p3), %s218_s8, 32, %s220_s14, %s205_s13  }
  0xcc PF: > { %s231_s29 = sand.u32 1, %s491_s9   ;;  %p671_p12 = scmp.ge.s32.totalorder %s503_s12, 2 }
  0xcd   : > { %s232_s28 = scalar_lea.sflag [#allocation4], %s231_s29 }
  0xce   : > { %p331_p13 = pnand %p671_p12, %p556_p6 }
  0xd0   : > { %p332_p0 = pneg %p331_p13 }
  0xd2   : > { %486 = dma.done.wait (%p332_p0), %s232_s28, 32  }
  0xd3   : > { %488 = vsyncadd (%p332_p0), %s232_s28, 4294967264  ;;  %p16_p5 = scmp.ge.s32.totalorder %s574_s23, 4   ;;  %s672_s9 = smov %s495_s10 }
  0xd4   : > { %s673_s10 = smov %s499_s11  ;;  %s674_s11 = smov %s583_s26 }
  0xd5   : > { %s675_s12 = smov %s574_s23  ;;  %18 = sbr.rel (!%p16_p5) target bundleno = 6 (0x6), region = 77 }
  0xda   :  { %238 = vsyncpa [#allocation3], 1 }
  0xdb   :  { %240 = vsyncpa [#allocation3 + $0x1], 1 }
  0xdc   :  { %241 = vsyncpa [#allocation6], 1 }
  0xdd   :  { %242 = vsyncpa [#allocation4], 1 }
  0xde   :  { %244 = vsyncpa [#allocation4 + $0x1], 1 }

</bundles_post_ra>
